<compile_context>
chip_gen: v7x
topology: tpu7x:2x2x1
jax: 0.10.0
libtpu: 0.0.40
codegen_flags: <defaults>
</compile_context>

<pallas_src>
import functools
import math

import jax
import jax.numpy as jnp
from jax.experimental import pallas as pl
from jax.experimental.pallas import tpu as pltpu

BN_EPS = 1e-5


def _round_up(x, m):
    return (x + m - 1) // m * m


def _linear_block_kernel(x_ref, wT_ref, params_ref, o_ref, *, m_valid):
    """One output-channel tile: fc + BatchNorm1d (batch stats) + ReLU, fused.

    x_ref:      (M_pad, K_pad)  flattened (B*N) rows, zero-padded features
    wT_ref:     (K_pad, tO)     fc weight tile, transposed, zero-padded
    params_ref: (2, tO)         row 0 = BN gamma, row 1 = BN beta (zero-padded)
    o_ref:      (M_pad, tO)

    The fc bias is intentionally omitted: under training-mode BatchNorm a
    per-channel constant added before normalization cancels exactly.
    """
    x = x_ref[...]
    # fc: x @ W^T (MXU, f32 accumulation even if operands are bf16)
    z = jnp.dot(x, wT_ref[...], preferred_element_type=jnp.float32)

    # Mask padded rows out of the batch statistics (exact BN over the M real
    # rows).  Compile-time branch: no masking cost when M is already aligned.
    m_pad = z.shape[0]
    if m_pad != m_valid:
        row = jax.lax.broadcasted_iota(jnp.int32, (m_pad, 1), 0)
        zs = jnp.where(row < m_valid, z, 0.0)
    else:
        zs = z

    # Single-pass batch stats: sum + sum-of-squares -> mean, biased variance
    # (matches PyTorch's training-mode forward normalization).
    inv_m = 1.0 / m_valid
    s1 = jnp.sum(zs, axis=0, keepdims=True)
    s2 = jnp.sum(zs * zs, axis=0, keepdims=True)
    mean = s1 * inv_m
    var = s2 * inv_m - mean * mean
    inv_std = jax.lax.rsqrt(var + BN_EPS)

    # Fold BN into one per-channel scale/shift so z is traversed only once more.
    gamma = params_ref[0:1, :]
    beta = params_ref[1:2, :]
    scale = inv_std * gamma
    shift = beta - mean * scale
    o_ref[...] = jnp.maximum(z * scale + shift, 0.0).astype(o_ref.dtype)


def linear_block(x, w, b, gamma, beta, *, block_o=128, matmul_dtype=None):
    """LinearBlock forward: x (B, N, C_in) -> (B, N, C_out).

    Equivalent to PyTorch
        relu(bn(fc(x).permute(0, 2, 1))).permute(0, 2, 1)
    with BatchNorm1d in training mode (batch statistics over (B, N)).
    Pads K/O to lane-dense multiples of 128 and M to a multiple of 8 (zero
    padding is exact for the matmul; padded channels have gamma=beta=0 so
    they produce finite zeros and are sliced off; padded rows are masked out
    of the BN stats).  Output-channel axis is tiled with a "parallel" grid.
    """
    B, N, K = x.shape
    O = w.shape[0]
    M = B * N
    out_dtype = x.dtype

    tO = max(128, _round_up(block_o, 128))
    K_pad = _round_up(K, 128)
    O_pad = _round_up(O, tO)
    tO = min(tO, O_pad)
    M_pad = _round_up(M, 8)

    xm = x.reshape(M, K)
    if (M_pad, K_pad) != (M, K):
        xm = jnp.pad(xm, ((0, M_pad - M), (0, K_pad - K)))
    wT = jnp.transpose(w)                                     # (K, O)
    if (K_pad, O_pad) != (K, O):
        wT = jnp.pad(wT, ((0, K_pad - K), (0, O_pad - O)))
    params = jnp.stack([gamma, beta], axis=0).astype(jnp.float32)   # (2, O)
    if O_pad != O:
        params = jnp.pad(params, ((0, 0), (0, O_pad - O)))

    if matmul_dtype is not None:          # e.g. jnp.bfloat16 on v6e / v7x
        xm = xm.astype(matmul_dtype)
        wT = wT.astype(matmul_dtype)

    del b  # fc bias cancels exactly under training-mode BatchNorm (see kernel).

    in_bytes = jnp.dtype(xm.dtype).itemsize
    # x resident (constant block index) + double-buffered wT/params/out tiles
    # + f32 temporaries of output-tile size.
    block_bytes = (2 * M_pad * K_pad * in_bytes
                   + 2 * K_pad * tO * in_bytes
                   + 2 * 2 * tO * 4
                   + 2 * M_pad * tO * 4
                   + 4 * M_pad * tO * 4)
    vmem_limit = int(min(96 * 1024 * 1024,
                         max(32 * 1024 * 1024, 2 * block_bytes)))

    cost = pl.CostEstimate(
        flops=2 * M_pad * K_pad * O_pad + 8 * M_pad * O_pad,
        transcendentals=O_pad,            # one rsqrt per channel
        bytes_accessed=in_bytes * (M_pad * K_pad + K_pad * O_pad)
        + 4 * (2 * O_pad + M_pad * O_pad),
    )

    kernel = functools.partial(_linear_block_kernel, m_valid=M)

    out = pl.pallas_call(
        kernel,
        out_shape=jax.ShapeDtypeStruct((M_pad, O_pad), out_dtype),
        grid=(O_pad // tO,),
        in_specs=[
            pl.BlockSpec((M_pad, K_pad), lambda j: (0, 0)),   # same x for every O tile
            pl.BlockSpec((K_pad, tO), lambda j: (0, j)),
            pl.BlockSpec((2, tO), lambda j: (0, j)),
        ],
        out_specs=pl.BlockSpec((M_pad, tO), lambda j: (0, j)),
        compiler_params=pltpu.CompilerParams(
            dimension_semantics=("parallel",),
            vmem_limit_bytes=vmem_limit,
        ),
        cost_estimate=cost,
    )(xm, wT, params)

    return out[:M, :O].reshape(B, N, O)


def reference(x, w, b, gamma, beta):
    """Pure-JAX reference of the PyTorch forward (training-mode BN)."""
    z = jnp.einsum("bnk,ok->bno", x, w) + b               # fc (bias included)
    mean = jnp.mean(z, axis=(0, 1), keepdims=True)        # BN over (B, N)
    var = jnp.mean((z - mean) ** 2, axis=(0, 1), keepdims=True)
    y = (z - mean) * jax.lax.rsqrt(var + BN_EPS) * gamma + beta
    return jnp.maximum(y, 0.0)


def _make_params(key, in_features, out_features):
    kw, kb = jax.random.split(key)
    # fc.weight ~ N(0, sqrt(2/out)); fc.bias ~ U(-1/sqrt(in), 1/sqrt(in))
    w = jax.random.normal(kw, (out_features, in_features), dtype=jnp.float32) \
        * math.sqrt(2.0 / out_features)
    bound = 1.0 / math.sqrt(in_features)
    b = jax.random.uniform(kb, (out_features,), dtype=jnp.float32,
                           minval=-bound, maxval=bound)
    gamma = jnp.ones((out_features,), dtype=jnp.float32)   # bn.weight = 1
    beta = jnp.zeros((out_features,), dtype=jnp.float32)   # bn.bias = 0
    return w, b, gamma, beta


if __name__ == "__main__":
    key = jax.random.PRNGKey(0)
    k0, k1, k2, k3 = jax.random.split(key, 4)

    # --- Test 1: class_linear-style shape (batch=2, seq=8, hidden=32) ------
    B, N, C = 2, 8, 32
    x = jax.random.normal(k0, (B, N, C), dtype=jnp.float32)
    w, b, gamma, beta = _make_params(k1, C, C)

    ref = reference(x, w, b, gamma, beta)
    out = jax.block_until_ready(linear_block(x, w, b, gamma, beta))
    assert out.shape == (B, N, C)
    assert jnp.allclose(out, ref, atol=3e-5, rtol=3e-5)

    # bf16 matmul operands (v6e/v7x MXU fast path); BN/ReLU math stays f32.
    out_bf16 = jax.block_until_ready(
        linear_block(x, w, b, gamma, beta, matmul_dtype=jnp.bfloat16))
    assert out_bf16.shape == (B, N, C)
    assert jnp.allclose(out_bf16, ref, atol=2e-1, rtol=2e-1)

    # --- Test 2: post_concat-style shape (2*C -> C), M not 8-aligned -------
    B2, N2, Cin2, Cout2 = 2, 6, 64, 32
    x2 = jax.random.normal(k2, (B2, N2, Cin2), dtype=jnp.float32)
    w2, b2, g2, be2 = _make_params(k3, Cin2, Cout2)

    ref2 = reference(x2, w2, b2, g2, be2)
    out2 = jax.block_until_ready(linear_block(x2, w2, b2, g2, be2))
    assert out2.shape == (B2, N2, Cout2)
    assert jnp.allclose(out2, ref2, atol=3e-5, rtol=3e-5)

    print("KERNEL_OK")
</pallas_src>

<mosaic_0001>
module attributes {stable_mosaic.version = 11 : i64} {
  func.func @_linear_block_kernel(%arg0: i32, %arg1: memref<16x128xf32, #tpu.memory_space<vmem>>, %arg2: memref<128x128xf32, #tpu.memory_space<vmem>>, %arg3: memref<2x128xf32, #tpu.memory_space<vmem>>, %arg4: memref<16x128xf32, #tpu.memory_space<vmem>>) attributes {dimension_semantics = [#tpu.dimension_semantics<parallel>], iteration_bounds = array<i64: 1>, scalar_prefetch = 0 : i64, scratch_operands = 0 : i64, tpu.core_type = #tpu.core_type<tc>, window_params = [{pipeline_mode = #tpu.pipeline_mode<synchronous>, transform_indices = @transform_0, window_bounds = array<i64: 16, 128>}, {transform_indices = @transform_1, window_bounds = array<i64: 128, 128>}, {transform_indices = @transform_2, window_bounds = array<i64: 2, 128>}, {transform_indices = @transform_3, window_bounds = array<i64: 16, 128>}]} {
    %c0 = arith.constant 0 : index
    %c0_0 = arith.constant 0 : index
    %0 = vector.load %arg1[%c0, %c0_0] : memref<16x128xf32, #tpu.memory_space<vmem>>, vector<16x128xf32>
    %c0_1 = arith.constant 0 : index
    %c0_2 = arith.constant 0 : index
    %1 = vector.load %arg2[%c0_1, %c0_2] : memref<128x128xf32, #tpu.memory_space<vmem>>, vector<128x128xf32>
    %cst = arith.constant dense<0.000000e+00> : vector<16x128xf32>
    %2 = tpu.matmul %0, %1, %cst {dimension_numbers = #tpu.dot_dimension_numbers<[1], [0], [0], [1], [0, 0, 1, 1], [], []>} : vector<16x128xf32>, vector<128x128xf32>, vector<16x128xf32> -> vector<16x128xf32>
    %cst_3 = arith.constant dense<0.000000e+00> : vector<128xf32>
    %3 = vector.multi_reduction <add>, %2, %cst_3 [0] : vector<16x128xf32> to vector<128xf32>
    %4 = vector.shape_cast %3 : vector<128xf32> to vector<1x128xf32>
    %5 = arith.mulf %2, %2 : vector<16x128xf32>
    %cst_4 = arith.constant dense<0.000000e+00> : vector<128xf32>
    %6 = vector.multi_reduction <add>, %5, %cst_4 [0] : vector<16x128xf32> to vector<128xf32>
    %7 = vector.shape_cast %6 : vector<128xf32> to vector<1x128xf32>
    %cst_5 = arith.constant 6.250000e-02 : f32
    %8 = vector.broadcast %cst_5 : f32 to vector<1x128xf32>
    %9 = arith.mulf %4, %8 : vector<1x128xf32>
    %cst_6 = arith.constant 6.250000e-02 : f32
    %10 = vector.broadcast %cst_6 : f32 to vector<1x128xf32>
    %11 = arith.mulf %7, %10 : vector<1x128xf32>
    %12 = arith.mulf %9, %9 : vector<1x128xf32>
    %13 = arith.subf %11, %12 : vector<1x128xf32>
    %cst_7 = arith.constant 9.99999974E-6 : f32
    %14 = vector.broadcast %cst_7 : f32 to vector<1x128xf32>
    %15 = arith.addf %13, %14 : vector<1x128xf32>
    %16 = math.rsqrt %15 : vector<1x128xf32>
    %c0_8 = arith.constant 0 : index
    %c0_9 = arith.constant 0 : index
    %17 = vector.load %arg3[%c0_8, %c0_9] : memref<2x128xf32, #tpu.memory_space<vmem>>, vector<1x128xf32>
    %c1 = arith.constant 1 : index
    %c0_10 = arith.constant 0 : index
    %18 = vector.load %arg3[%c1, %c0_10] : memref<2x128xf32, #tpu.memory_space<vmem>>, vector<1x128xf32>
    %19 = arith.mulf %16, %17 : vector<1x128xf32>
    %20 = arith.mulf %9, %19 : vector<1x128xf32>
    %21 = arith.subf %18, %20 : vector<1x128xf32>
    %22 = vector.broadcast %19 : vector<1x128xf32> to vector<16x128xf32>
    %23 = arith.mulf %2, %22 : vector<16x128xf32>
    %24 = vector.broadcast %21 : vector<1x128xf32> to vector<16x128xf32>
    %25 = arith.addf %23, %24 : vector<16x128xf32>
    %cst_11 = arith.constant 0.000000e+00 : f32
    %26 = vector.broadcast %cst_11 : f32 to vector<16x128xf32>
    %27 = arith.maximumf %25, %26 : vector<16x128xf32>
    %c0_12 = arith.constant 0 : index
    %c0_13 = arith.constant 0 : index
    %28 = vector.load %arg4[%c0_12, %c0_13] : memref<16x128xf32, #tpu.memory_space<vmem>>, vector<16x128xf32>
    tpu.vector_store %arg4[%c0_12, %c0_13], %27 {strides = array<i32>} : memref<16x128xf32, #tpu.memory_space<vmem>>, vector<16x128xf32>,
    return
  }
  func.func @transform_0(%arg0: i32) -> (i32, i32) {
    %c0_i32 = arith.constant 0 : i32
    %c0_i32_0 = arith.constant 0 : i32
    %c0_i32_1 = arith.constant 0 : i32
    return %c0_i32, %c0_i32_0 : i32, i32
  }
  func.func @transform_1(%arg0: i32) -> (i32, i32) {
    %c0_i32 = arith.constant 0 : i32
    %c0_i32_0 = arith.constant 0 : i32
    return %c0_i32, %arg0 : i32, i32
  }
  func.func @transform_2(%arg0: i32) -> (i32, i32) {
    %c0_i32 = arith.constant 0 : i32
    %c0_i32_0 = arith.constant 0 : i32
    return %c0_i32, %arg0 : i32, i32
  }
  func.func @transform_3(%arg0: i32) -> (i32, i32) {
    %c0_i32 = arith.constant 0 : i32
    %c0_i32_0 = arith.constant 0 : i32
    return %c0_i32, %arg0 : i32, i32
  }
}

</mosaic_0001>

<bundles_post_ra>
// kernel: tpu_custom_call.1
= control target key start
LH: loop header
LB: loop body
LE: loop exit
PB: predicated region body
PF: predicated region fallthrough
CT: control target
= control target key end

     0   :  { %8 = vsyncpa [#allocation3], 0  ;;  %s437_s0 = inlined_call_operand.hbm [shape: f32[16,128], index: 0, kind: input, shape index: {}]   ;;  %s438_s1 = inlined_call_operand.hbm [shape: f32[128,128], index: 1, kind: input, shape index: {}]   ;;  %s439_s2 = inlined_call_operand.vmem [shape: f32[2,128], index: 2, kind: input, shape index: {}]   ;;  %s440_s3 = inlined_call_operand.hbm [shape: f32[16,128], index: 3, kind: output, shape index: {}]  }
   0x1   :  { %9 = vsyncpa [#allocation6], 0 }
   0x2   :  { %10 = vsyncpa [#allocation4], 0  ;;  %s361_s12 = smov [#allocation2]   ;;  %s289_s16 = scalar_lea.hbm %s437_s0, 256 }
   0x3   :  { %s16_s13 = sshll.u32 %s361_s12, 4  ;;  %p290_p0 = scmp.ne.s32.totalorder %s437_s0, %s289_s16  ;;  %s17_s13 = int_to_ptr.vmem [resolvable:$true] %s16_s13 }
   0x4   :  { %p293_p1 = scmp.lt.u32.totalorder %s289_s16, %s437_s0 }
   0x6   :  { %p295_p2 = pnand %p293_p1, %p290_p0 }
   0x8   :  { %298 = shalt.err (!%p295_p2)
}
   0x9   :  { %s299_s21 = scalar_lea.vmem %s17_s13, 256  ;;  %p304_p4 = scmp.lt.s32.totalorder %s17_s13, %s17_s13 }
   0xa   :  { %p300_p3 = scmp.ne.s32.totalorder %s17_s13, %s299_s21  ;;  %p305_p5 = scmp.lt.s32.totalorder %s299_s21, %s299_s21 }
   0xc   :  { %p306_p6 = por %p305_p5, %p304_p4 }
   0xe   :  { %p307_p7 = pnand %p306_p6, %p300_p3 }
  0x10   :  { %310 = shalt.err (!%p307_p7)
}
  0x11   :  { %s362_s22 = smov 128   ;;  %s363_s23 = smov 8  }
  0x12   :  { %22 = dma.hbm_to_vmem [thread:$0]  %s437_s0, 256, %s17_s13, [#allocation3], %s362_s22, %s362_s22, %s363_s23  }
  0x13   :  { %s364_s26 = smov [#allocation5]   ;;  %s311_s30 = scalar_lea.hbm %s438_s1, 2048 }
  0x14   :  { %s28_s27 = sshll.u32 %s364_s26, 4  ;;  %p312_p8 = scmp.ne.s32.totalorder %s438_s1, %s311_s30  ;;  %s29_s27 = int_to_ptr.vmem [resolvable:$true] %s28_s27 }
  0x15   :  { %p315_p9 = scmp.lt.u32.totalorder %s311_s30, %s438_s1 }
  0x17   :  { %p317_p10 = pnand %p315_p9, %p312_p8 }
  0x19   :  { %320 = shalt.err (!%p317_p10)
}
  0x1a   :  { %s321_s8 = scalar_lea.vmem %s29_s27, 2048  ;;  %p326_p12 = scmp.lt.s32.totalorder %s29_s27, %s29_s27 }
  0x1b   :  { %p322_p11 = scmp.ne.s32.totalorder %s29_s27, %s321_s8  ;;  %p327_p13 = scmp.lt.s32.totalorder %s321_s8, %s321_s8 }
  0x1d   :  { %p328_p0 = por %p327_p13, %p326_p12 }
  0x1f   :  { %p329_p1 = pnand %p328_p0, %p322_p11 }
  0x21   :  { %332 = shalt.err (!%p329_p1)
}
  0x22   :  { %34 = dma.hbm_to_vmem [thread:$0]  %s438_s1, 2048, %s29_s27, [#allocation6], %s362_s22, %s362_s22, %s363_s23  }
  0x23   :  { %355 = dma.done.wait [#allocation3], 256  }
  0x24   :  { %356 = vsyncadd [#allocation3], 4294967040 }
  0x25   :  { %357 = dma.done.wait [#allocation6], 2048  }
  0x26   :  { %358 = vsyncadd [#allocation6], 4294965248  ;;  %v45_v0 = vld [vmem:[#allocation5] sm:$0xff]  ;;  %v46_v1 = vld [vmem:[#allocation5 + $0x8] sm:$0xff]  ;;  %v163_v49 = vlaneseq  ;;  %s365_s13 = smov [#allocation7]  }
  0x27   :  { %v47_v2 = vld [vmem:[#allocation5 + $0x10] sm:$0xff]  ;;  %v250_v3 = vpack.c.bf16 %v46_v1, %v45_v0  ;;  %v48_v4 = vld [vmem:[#allocation5 + $0x18] sm:$0xff]  ;;  %v49_v6 = vld [vmem:[#allocation5 + $0x20] sm:$0xff]  ;;  %s184_s14 = sshll.u32 %s365_s13, 4  ;;  %s185_s14 = int_to_ptr.vmem [resolvable:$true] %s184_s14 }
  0x28   :  { %v254_v5 = vpack.c.bf16 %v48_v4, %v47_v2  ;;  %v50_v7 = vld [vmem:[#allocation5 + $0x28] sm:$0xff]  ;;  %v43_v9 = vld [vmem:[#allocation2] sm:$0xff]  ;;  %v52_v11 = vld [vmem:[#allocation5 + $0x38] sm:$0xff]  ;;  %v164_v50 = vshrl.u32 %v163_v49, 7  ;;  %s333_s15 = scalar_lea.vmem %s185_s14, 256  ;;  %p338_p3 = scmp.lt.s32.totalorder %s185_s14, %s185_s14 }
  0x29   :  { %251 = vmatprep.subr.bf16.mxu0 %v250_v3  ;;  %v258_v8 = vpack.c.bf16 %v50_v7, %v49_v6  ;;  %v51_v10 = vld [vmem:[#allocation5 + $0x30] sm:$0xff]  ;;  %247 = vmatprep.mubr.f32.mxu0 %v43_v9  ;;  %v53_v13 = vld [vmem:[#allocation5 + $0x40] sm:$0xff]  ;;  %v54_v14 = vld [vmem:[#allocation5 + $0x48] sm:$0xff]  ;;  %p334_p2 = scmp.ne.s32.totalorder %s185_s14, %s333_s15  ;;  %p339_p4 = scmp.lt.s32.totalorder %s333_s15, %s333_s15 }
  0x2a   :  { %253 = vmatpush3.bf16.msra.mxu0 %v250_v3  ;;  %v262_v12 = vpack.c.bf16 %v52_v11, %v51_v10  ;;  %v266_v15 = vpack.c.bf16 %v54_v14, %v53_v13  ;;  %v55_v16 = vld [vmem:[#allocation5 + $0x50] sm:$0xff]  ;;  %v56_v17 = vld [vmem:[#allocation5 + $0x58] sm:$0xff]  ;;  %v57_v19 = vld [vmem:[#allocation5 + $0x60] sm:$0xff]  ;;  %v165_v52 = vsub.s32 0, %v164_v50 }
  0x2b   :  { %255 = vmatprep.subr.bf16.mxu0 %v254_v5  ;;  %v270_v18 = vpack.c.bf16 %v56_v17, %v55_v16  ;;  %v58_v20 = vld [vmem:[#allocation5 + $0x68] sm:$0xff]  ;;  %v59_v22 = vld [vmem:[#allocation5 + $0x70] sm:$0xff]  ;;  %v60_v23 = vld [vmem:[#allocation5 + $0x78] sm:$0xff]  ;;  %p340_p5 = por %p339_p4, %p338_p3 }
  0x2c   :  { %v274_v21 = vpack.c.bf16 %v58_v20, %v57_v19  ;;  %v278_v24 = vpack.c.bf16 %v60_v23, %v59_v22  ;;  %v44_v25 = vld [vmem:[#allocation2 + $0x8] sm:$0xff]  ;;  %v158_v51 = vld [vmem:[%s439_s2] sm:$0x1]  ;;  %v159_v55 = vld [vmem:[%s439_s2 + $0x1] sm:$0x1] }
  0x2d   :  { %p341_p6 = pnand %p340_p5, %p334_p2 }
  0x2e   :  { %257 = vmatpush3.bf16.msra.mxu0 %v254_v5 }
  0x2f   :  { %259 = vmatprep.subr.bf16.mxu0 %v258_v8 }
  0x32   :  { %261 = vmatpush3.bf16.msra.mxu0 %v258_v8 }
  0x33   :  { %263 = vmatprep.subr.bf16.mxu0 %v262_v12 }
  0x36   :  { %265 = vmatpush3.bf16.msra.mxu0 %v262_v12 }
  0x37   :  { %267 = vmatprep.subr.bf16.mxu0 %v266_v15 }
  0x3a   :  { %269 = vmatpush3.bf16.msra.mxu0 %v266_v15 }
  0x3b   :  { %271 = vmatprep.subr.bf16.mxu0 %v270_v18 }
  0x3e   :  { %273 = vmatpush3.bf16.msra.mxu0 %v270_v18 }
  0x3f   :  { %275 = vmatprep.subr.bf16.mxu0 %v274_v21 }
  0x42   :  { %277 = vmatpush3.bf16.msra.mxu0 %v274_v21 }
  0x43   :  { %279 = vmatprep.subr.bf16.mxu0 %v278_v24 }
  0x46   :  { %281 = vmatpush3.bf16.msra.mxu0 %v278_v24 }
  0x49   :  { %248 = vmatmul.mubr.f32.vlgmr.msra.gmra.mrb[0].mxu0 %v44_v25 }
 0x11c   :  { %v249_v26 = vpop.f32.mrb[0].mxu0 }
 0x11d   :  { %v144_v27 = vmul.f32 %v249_v26, %v249_v26  ;;  %v127_v28 = vpop.f32.mrb[1].mxu0 }
 0x11e   :  { %v136_v29 = vadd.f32 %v249_v26, %v127_v28  ;;  %v143_v30 = vmul.f32 %v127_v28, %v127_v28 }
 0x120   :  { %v137_v31 = vrot.slane %v136_v29, 4  ;;  %v145_v32 = vadd.f32 %v144_v27, %v143_v30 }
 0x122   :  { %v138_v33 = vadd.f32 %v137_v31, %v136_v29  ;;  %v146_v34 = vrot.slane %v145_v32, 4 }
 0x124   :  { %v139_v35 = vrot.slane %v138_v33, 2  ;;  %v147_v36 = vadd.f32 %v146_v34, %v145_v32 }
 0x126   :  { %v140_v37 = vadd.f32 %v139_v35, %v138_v33  ;;  %v148_v38 = vrot.slane %v147_v36, 2 }
 0x128   :  { %v141_v39 = vrot.slane %v140_v37, 1  ;;  %v149_v40 = vadd.f32 %v148_v38, %v147_v36 }
 0x12a   :  { %v142_v41 = vadd.f32 %v141_v39, %v140_v37  ;;  %v150_v42 = vrot.slane %v149_v40, 1 }
 0x12c   :  { %v151_v43 = vadd.f32 %v150_v42, %v149_v40  ;;  %v152_v44 = vmul.f32 0.0625, %v142_v41 }
 0x12e   :  { %v153_v45 = vmul.f32 0.0625, %v151_v43  ;;  %v154_v46 = vmul.f32 %v152_v44, %v152_v44 }
 0x130   :  { %v155_v47 = vsub.f32 %v153_v45, %v154_v46 }
 0x132   :  { %v156_v48 = vadd.f32 1e-05, %v155_v47 }
 0x134   :  { %287 = vrsqrt.f32 %v156_v48 }
 0x13e   :  { %v288_v53 = vpop.eup %287 }
 0x13f   :  { %v160_v54 = vmul.f32 %v288_v53, %v158_v51 }
 0x141   :  { %v161_v56 = vmul.f32 %v160_v54, %v152_v44  ;;  %v166_v57 = vrot.slane %v160_v54, %v165_v52 }
 0x143   :  { %v162_v58 = vsub.f32 %v159_v55, %v161_v56  ;;  %v167_v59 = vmul.f32 %v166_v57, %v127_v28  ;;  %v168_v60 = vmul.f32 %v249_v26, %v166_v57 }
 0x145   :  { %v172_v61 = vrot.slane %v162_v58, %v165_v52 }
 0x147   :  { %v173_v62 = vadd.f32 %v172_v61, %v167_v59  ;;  %v174_v63 = vadd.f32 %v172_v61, %v168_v60 }
 0x149   :  { %v175_v0 = vmax.f32 %v173_v62, 0.0  ;;  %v176_v1 = vmax.f32 %v174_v63, 0.0 }
 0x14b   :  { %177 = vst [vmem:[#allocation7] sm:$0xff] %v175_v0  ;;  %178 = vst [vmem:[#allocation7 + $0x8] sm:$0xff] %v176_v1 }
 0x14c   :  { %344 = shalt.err (!%p341_p6)
}
 0x14d   :  { %s345_s17 = scalar_lea.hbm %s440_s3, 256 }
 0x14e   :  { %p346_p7 = scmp.ne.s32.totalorder %s440_s3, %s345_s17  ;;  %p349_p8 = scmp.lt.u32.totalorder %s345_s17, %s440_s3 }
 0x150   :  { %p351_p9 = pnand %p349_p8, %p346_p7 }
 0x152   :  { %354 = shalt.err (!%p351_p9)
}
 0x153   :  { %190 = dma.vmem_to_hbm [thread:$0]  %s185_s14, 256, %s440_s3, [#allocation4], %s362_s22, %s362_s22, %s363_s23  }
 0x154   :  { %359 = dma.done.wait [#allocation4], 256  }
 0x155   :  { %360 = vsyncadd [#allocation4], 4294967040 }
 0x156   :  { %194 = vsyncpa [#allocation3], 1 }
 0x157   :  { %195 = vsyncpa [#allocation6], 1 }
 0x158   :  { %196 = vsyncpa [#allocation4], 1 }

</bundles_post_ra>
